<compile_context>
chip_gen: v7x
topology: tpu7x:2x2x1
jax: 0.10.0
libtpu: 0.0.40
codegen_flags: <defaults>
</compile_context>

<pallas_src>
import math

import jax
import jax.numpy as jnp
from jax.experimental import pallas as pl
from jax.experimental.pallas import tpu as pltpu

INPUT_SIZE = 83
H1 = 128
H2 = 64
OUTPUT_SIZE = 20


def _round_up(x, m):
    return ((x + m - 1) // m) * m


def dqn_kernel(x_ref, w1_ref, b1_ref, w2_ref, b2_ref, w3_ref, b3_ref, o_ref):
    # One batch tile per grid step: three MXU matmuls (bf16 in, f32 acc)
    # + VPU bias/ReLU + EUP tanh.  Weights map to the same block every grid
    # step -> VMEM-resident, DMA'd once.
    x = x_ref[...].astype(jnp.bfloat16)                              # (TB, 83)
    h1 = jnp.dot(x, w1_ref[...], preferred_element_type=jnp.float32) + b1_ref[...]
    h1 = jnp.maximum(h1, 0.0)                                        # ReLU (f32)
    # Dropout(0.1): identity at inference time.
    h2 = jnp.dot(h1.astype(jnp.bfloat16), w2_ref[...],
                 preferred_element_type=jnp.float32) + b2_ref[...]
    h2 = jnp.maximum(h2, 0.0)                                        # ReLU (f32)
    # Dropout(0.1): identity at inference time.
    out = jnp.dot(h2.astype(jnp.bfloat16), w3_ref[...],
                  preferred_element_type=jnp.float32) + b3_ref[...]
    o_ref[...] = jnp.tanh(out).astype(o_ref.dtype)                   # Tanh, (TB, 20)


def prepare_params(params):
    """One-time dtype prep (hoisted out of the per-call forward)."""
    w1, b1, w2, b2, w3, b3 = params
    return (w1.astype(jnp.bfloat16), b1,
            w2.astype(jnp.bfloat16), b2,
            w3.astype(jnp.bfloat16), b3)


def dqn_forward(x, prep_params):
    """x: (B, 83) f32.  prep_params: output of prepare_params (x@W layout).
    Returns (B, 20) f32."""
    w1, b1, w2, b2, w3, b3 = prep_params
    B = x.shape[0]

    # Batch tile: multiple of 8 (sublane); aim for >=2 grid steps when B is
    # large enough so the ("parallel",) axis can shard across v7x's 2 TCs;
    # cap at 1024 rows (double-buffered x/out tiles ~0.7 MiB + resident
    # weights ~50 KiB, far below scoped VMEM on every generation) while
    # amortizing the ~0.35us per-grid-step overhead.
    TB = max(8, min(1024, _round_up((B + 1) // 2, 8)))
    nb = pl.cdiv(B, TB)

    return pl.pallas_call(
        dqn_kernel,
        out_shape=jax.ShapeDtypeStruct((B, OUTPUT_SIZE), jnp.float32),
        grid_spec=pltpu.PrefetchScalarGridSpec(
            num_scalar_prefetch=0,
            grid=(nb,),
            in_specs=[
                # x streams per batch tile (double-buffered by the pipeline);
                # last dim 83 = full array extent (legal BlockSpec).
                pl.BlockSpec((TB, INPUT_SIZE), lambda i: (i, 0)),
                # Weights / biases: full-extent blocks, same index every step
                # -> VMEM-resident, DMA'd once.
                pl.BlockSpec(w1.shape, lambda i: (0, 0)),
                pl.BlockSpec(b1.shape, lambda i: (0, 0)),
                pl.BlockSpec(w2.shape, lambda i: (0, 0)),
                pl.BlockSpec(b2.shape, lambda i: (0, 0)),
                pl.BlockSpec(w3.shape, lambda i: (0, 0)),
                pl.BlockSpec(b3.shape, lambda i: (0, 0)),
            ],
            # Narrow output: (TB, 20), last dim = full array extent, so no
            # padded write and no post-kernel slice.
            out_specs=pl.BlockSpec((TB, OUTPUT_SIZE), lambda i: (i, 0)),
        ),
        compiler_params=pltpu.CompilerParams(
            dimension_semantics=("parallel",),   # megacore-shard batch tiles on v7x
        ),
    )(x, w1, b1, w2, b2, w3, b3)


def xavier_uniform(key, fan_in, fan_out):
    # Matches torch.nn.init.xavier_uniform_ on a (fan_out, fan_in) weight;
    # we store the transpose (fan_in, fan_out) so the kernel computes x @ W.
    bound = math.sqrt(6.0 / (fan_in + fan_out))
    return jax.random.uniform(
        key, (fan_in, fan_out), dtype=jnp.float32, minval=-bound, maxval=bound
    )


def init_params(key):
    k1, k2, k3 = jax.random.split(key, 3)
    w1 = xavier_uniform(k1, INPUT_SIZE, H1)
    b1 = jnp.zeros((1, H1), dtype=jnp.float32)           # nn.init.constant_(bias, 0)
    w2 = xavier_uniform(k2, H1, H2)
    b2 = jnp.zeros((1, H2), dtype=jnp.float32)
    w3 = xavier_uniform(k3, H2, OUTPUT_SIZE)
    b3 = jnp.zeros((1, OUTPUT_SIZE), dtype=jnp.float32)
    return (w1, b1, w2, b2, w3, b3)


def reference_forward(x, params):
    # Plain-JAX f32 reference of the same eval-mode forward pass.
    w1, b1, w2, b2, w3, b3 = params
    h1 = jnp.maximum(x @ w1 + b1, 0.0)
    h2 = jnp.maximum(h1 @ w2 + b2, 0.0)
    return jnp.tanh(h2 @ w3 + b3)


if __name__ == "__main__":
    key = jax.random.PRNGKey(0)
    pkey, xkey = jax.random.split(key)
    params = init_params(pkey)
    prep = prepare_params(params)   # one-time weight dtype prep (not per call)

    batch = 8
    x = jax.random.normal(xkey, (batch, INPUT_SIZE), dtype=jnp.float32)

    out = dqn_forward(x, prep)
    out = jax.block_until_ready(out)

    ref = reference_forward(x, params)
    assert out.shape == (batch, OUTPUT_SIZE)
    # bf16 MXU inputs (f32 accumulation) vs f32 reference: loose-but-tight tolerance.
    assert jnp.allclose(out, ref, atol=3e-2, rtol=3e-2), "Pallas output mismatch"

    print("KERNEL_OK")
</pallas_src>

<mosaic_0001>
module attributes {stable_mosaic.version = 11 : i64} {
  func.func @dqn_kernel(%arg0: i32, %arg1: memref<8x83xf32, #tpu.memory_space<vmem>>, %arg2: memref<83x128xbf16, #tpu.memory_space<vmem>>, %arg3: memref<1x128xf32, #tpu.memory_space<vmem>>, %arg4: memref<128x64xbf16, #tpu.memory_space<vmem>>, %arg5: memref<1x64xf32, #tpu.memory_space<vmem>>, %arg6: memref<64x20xbf16, #tpu.memory_space<vmem>>, %arg7: memref<1x20xf32, #tpu.memory_space<vmem>>, %arg8: memref<8x20xf32, #tpu.memory_space<vmem>>) attributes {dimension_semantics = [#tpu.dimension_semantics<parallel>], iteration_bounds = array<i64: 1>, scalar_prefetch = 0 : i64, scratch_operands = 0 : i64, tpu.core_type = #tpu.core_type<tc>, window_params = [{transform_indices = @transform_0, window_bounds = array<i64: 8, 83>}, {pipeline_mode = #tpu.pipeline_mode<synchronous>, transform_indices = @transform_1, window_bounds = array<i64: 83, 128>}, {pipeline_mode = #tpu.pipeline_mode<synchronous>, transform_indices = @transform_2, window_bounds = array<i64: 1, 128>}, {pipeline_mode = #tpu.pipeline_mode<synchronous>, transform_indices = @transform_3, window_bounds = array<i64: 128, 64>}, {pipeline_mode = #tpu.pipeline_mode<synchronous>, transform_indices = @transform_4, window_bounds = array<i64: 1, 64>}, {pipeline_mode = #tpu.pipeline_mode<synchronous>, transform_indices = @transform_5, window_bounds = array<i64: 64, 20>}, {pipeline_mode = #tpu.pipeline_mode<synchronous>, transform_indices = @transform_6, window_bounds = array<i64: 1, 20>}, {transform_indices = @transform_7, window_bounds = array<i64: 8, 20>}]} {
    %c0 = arith.constant 0 : index
    %c0_0 = arith.constant 0 : index
    %0 = vector.load %arg1[%c0, %c0_0] : memref<8x83xf32, #tpu.memory_space<vmem>>, vector<8x83xf32>
    %1 = arith.truncf %0 : vector<8x83xf32> to vector<8x83xbf16>
    %c0_1 = arith.constant 0 : index
    %c0_2 = arith.constant 0 : index
    %2 = vector.load %arg2[%c0_1, %c0_2] : memref<83x128xbf16, #tpu.memory_space<vmem>>, vector<83x128xbf16>
    %cst = arith.constant dense<0.000000e+00> : vector<8x128xf32>
    %3 = tpu.matmul %1, %2, %cst {dimension_numbers = #tpu.dot_dimension_numbers<[1], [0], [0], [1], [0, 0, 1, 1], [], []>} : vector<8x83xbf16>, vector<83x128xbf16>, vector<8x128xf32> -> vector<8x128xf32>
    %c0_3 = arith.constant 0 : index
    %c0_4 = arith.constant 0 : index
    %4 = vector.load %arg3[%c0_3, %c0_4] : memref<1x128xf32, #tpu.memory_space<vmem>>, vector<1x128xf32>
    %5 = vector.broadcast %4 : vector<1x128xf32> to vector<8x128xf32>
    %6 = arith.addf %3, %5 : vector<8x128xf32>
    %cst_5 = arith.constant 0.000000e+00 : f32
    %7 = vector.broadcast %cst_5 : f32 to vector<8x128xf32>
    %8 = arith.maximumf %6, %7 : vector<8x128xf32>
    %9 = arith.truncf %8 : vector<8x128xf32> to vector<8x128xbf16>
    %c0_6 = arith.constant 0 : index
    %c0_7 = arith.constant 0 : index
    %10 = vector.load %arg4[%c0_6, %c0_7] : memref<128x64xbf16, #tpu.memory_space<vmem>>, vector<128x64xbf16>
    %cst_8 = arith.constant dense<0.000000e+00> : vector<8x64xf32>
    %11 = tpu.matmul %9, %10, %cst_8 {dimension_numbers = #tpu.dot_dimension_numbers<[1], [0], [0], [1], [0, 0, 1, 1], [], []>} : vector<8x128xbf16>, vector<128x64xbf16>, vector<8x64xf32> -> vector<8x64xf32>
    %c0_9 = arith.constant 0 : index
    %c0_10 = arith.constant 0 : index
    %12 = vector.load %arg5[%c0_9, %c0_10] : memref<1x64xf32, #tpu.memory_space<vmem>>, vector<1x64xf32>
    %13 = vector.broadcast %12 : vector<1x64xf32> to vector<8x64xf32>
    %14 = arith.addf %11, %13 : vector<8x64xf32>
    %cst_11 = arith.constant 0.000000e+00 : f32
    %15 = vector.broadcast %cst_11 : f32 to vector<8x64xf32>
    %16 = arith.maximumf %14, %15 : vector<8x64xf32>
    %17 = arith.truncf %16 : vector<8x64xf32> to vector<8x64xbf16>
    %c0_12 = arith.constant 0 : index
    %c0_13 = arith.constant 0 : index
    %18 = vector.load %arg6[%c0_12, %c0_13] : memref<64x20xbf16, #tpu.memory_space<vmem>>, vector<64x20xbf16>
    %cst_14 = arith.constant dense<0.000000e+00> : vector<8x20xf32>
    %19 = tpu.matmul %17, %18, %cst_14 {dimension_numbers = #tpu.dot_dimension_numbers<[1], [0], [0], [1], [0, 0, 1, 1], [], []>} : vector<8x64xbf16>, vector<64x20xbf16>, vector<8x20xf32> -> vector<8x20xf32>
    %c0_15 = arith.constant 0 : index
    %c0_16 = arith.constant 0 : index
    %20 = vector.load %arg7[%c0_15, %c0_16] : memref<1x20xf32, #tpu.memory_space<vmem>>, vector<1x20xf32>
    %21 = vector.broadcast %20 : vector<1x20xf32> to vector<8x20xf32>
    %22 = arith.addf %19, %21 : vector<8x20xf32>
    %23 = math.tanh %22 : vector<8x20xf32>
    %c0_17 = arith.constant 0 : index
    %c0_18 = arith.constant 0 : index
    %24 = vector.load %arg8[%c0_17, %c0_18] : memref<8x20xf32, #tpu.memory_space<vmem>>, vector<8x20xf32>
    tpu.vector_store %arg8[%c0_17, %c0_18], %23 {strides = array<i32>} : memref<8x20xf32, #tpu.memory_space<vmem>>, vector<8x20xf32>,
    return
  }
  func.func @transform_0(%arg0: i32) -> (i32, i32) {
    %c0_i32 = arith.constant 0 : i32
    %c0_i32_0 = arith.constant 0 : i32
    return %arg0, %c0_i32 : i32, i32
  }
  func.func @transform_1(%arg0: i32) -> (i32, i32) {
    %c0_i32 = arith.constant 0 : i32
    %c0_i32_0 = arith.constant 0 : i32
    %c0_i32_1 = arith.constant 0 : i32
    return %c0_i32, %c0_i32_0 : i32, i32
  }
  func.func @transform_2(%arg0: i32) -> (i32, i32) {
    %c0_i32 = arith.constant 0 : i32
    %c0_i32_0 = arith.constant 0 : i32
    %c0_i32_1 = arith.constant 0 : i32
    return %c0_i32, %c0_i32_0 : i32, i32
  }
  func.func @transform_3(%arg0: i32) -> (i32, i32) {
    %c0_i32 = arith.constant 0 : i32
    %c0_i32_0 = arith.constant 0 : i32
    %c0_i32_1 = arith.constant 0 : i32
    return %c0_i32, %c0_i32_0 : i32, i32
  }
  func.func @transform_4(%arg0: i32) -> (i32, i32) {
    %c0_i32 = arith.constant 0 : i32
    %c0_i32_0 = arith.constant 0 : i32
    %c0_i32_1 = arith.constant 0 : i32
    return %c0_i32, %c0_i32_0 : i32, i32
  }
  func.func @transform_5(%arg0: i32) -> (i32, i32) {
    %c0_i32 = arith.constant 0 : i32
    %c0_i32_0 = arith.constant 0 : i32
    %c0_i32_1 = arith.constant 0 : i32
    return %c0_i32, %c0_i32_0 : i32, i32
  }
  func.func @transform_6(%arg0: i32) -> (i32, i32) {
    %c0_i32 = arith.constant 0 : i32
    %c0_i32_0 = arith.constant 0 : i32
    %c0_i32_1 = arith.constant 0 : i32
    return %c0_i32, %c0_i32_0 : i32, i32
  }
  func.func @transform_7(%arg0: i32) -> (i32, i32) {
    %c0_i32 = arith.constant 0 : i32
    %c0_i32_0 = arith.constant 0 : i32
    return %arg0, %c0_i32 : i32, i32
  }
}

</mosaic_0001>

<bundles_post_ra>
// kernel: tpu_custom_call.1
= control target key start
LH: loop header
LB: loop body
LE: loop exit
PB: predicated region body
PF: predicated region fallthrough
CT: control target
= control target key end

     0   :  { %v487_v1 = vmov 0.0   ;;  %vm85_vm0 = vcmask 1040384   ;;  %vm488_vm1 = vmmov 0   ;;  %vm86_vm2 = vcmask 1041408   ;;  %s633_s0 = inlined_call_operand.vmem [shape: f32[8,83], index: 0, kind: input, shape index: {}]   ;;  %s634_s1 = inlined_call_operand.vmem [shape: bf16[83,128], index: 1, kind: input, shape index: {}]   ;;  %s635_s2 = inlined_call_operand.vmem [shape: f32[1,128], index: 2, kind: input, shape index: {}]   ;;  %s636_s3 = inlined_call_operand.vmem [shape: bf16[128,64], index: 3, kind: input, shape index: {}]   ;;  %s637_s4 = inlined_call_operand.vmem [shape: f32[1,64], index: 4, kind: input, shape index: {}]   ;;  %s638_s5 = inlined_call_operand.vmem [shape: bf16[64,20], index: 5, kind: input, shape index: {}]   ;;  %s639_s6 = inlined_call_operand.vmem [shape: f32[1,20], index: 6, kind: input, shape index: {}]   ;;  %s640_s7 = inlined_call_operand.hbm [shape: f32[8,20], index: 7, kind: output, shape index: {}]  }
   0x1   :  { %v443_v0 = vld [vmem:[%s634_s1] sm:$0xff]   ;;  %391 = vmatprep.subr.bf16.mxu0 %v487_v1  ;;  %407 = vmatprep.subr.bf16.mxu1 %v487_v1  ;;  %v444_v2 = vld [vmem:[%s634_s1 + $0x8] sm:$0xff]   ;;  %v445_v3 = vld [vmem:[%s634_s1 + $0x10] sm:$0xff]   ;;  %v489_v6 = vmov 65535  }
   0x2   :  { %392 = vmatpush3.bf16.msra.mxu0 %v443_v0  ;;  %v449_v4 = vld [vmem:[%s636_s3] sm:$0xff]   ;;  %403 = vmatprep.mubr.msk.bf16.mxu0 %vm488_vm1, %v487_v1  ;;  %v450_v5 = vld [vmem:[%s636_s3 + $0x8] sm:$0xff]   ;;  %v87_v7 = vsel %vm85_vm0, 4294967295, %v489_v6  ;;  %v446_v8 = vld [vmem:[%s634_s1 + $0x18] sm:$0xff]  }
   0x3   :  { %393 = vmatprep.subr.bf16.mxu0 %v487_v1  ;;  %408 = vmatpush3.bf16.msra.mxu1 %v449_v4  ;;  %v447_v9 = vld [vmem:[%s634_s1 + $0x20] sm:$0xff]   ;;  %v448_v10 = vld [vmem:[%s634_s1 + $0x28] ss:$0 sps:$4 sm:$0x33]   ;;  %v88_v11 = vsel %vm86_vm2, %v87_v7, 0  ;;  %v451_v12 = vld [vmem:[%s636_s3 + $0x10] sm:$0xff]  }
   0x4   :  { %423 = vmatprep.mubr.msk.bf16.mxu1 %vm488_vm1, %v487_v1  ;;  %409 = vmatprep.subr.bf16.mxu1 %v487_v1  ;;  %v452_v13 = vld [vmem:[%s636_s3 + $0x18] sm:$0xff]  }
   0x6   :  { %394 = vmatpush3.bf16.msra.mxu0 %v444_v2 }
   0x7   :  { %395 = vmatprep.subr.bf16.mxu0 %v487_v1  ;;  %410 = vmatpush3.bf16.msra.mxu1 %v450_v5 }
   0x8   :  { %411 = vmatprep.subr.bf16.mxu1 %v487_v1 }
   0xa   :  { %396 = vmatpush3.bf16.msra.mxu0 %v445_v3 }
   0xb   :  { %397 = vmatprep.subr.bf16.mxu0 %v487_v1  ;;  %412 = vmatpush3.bf16.msra.mxu1 %v451_v12 }
   0xe   :  { %398 = vmatpush3.bf16.msra.mxu0 %v446_v8 }
   0xf   :  { %399 = vmatprep.subr.bf16.mxu0 %v487_v1 }
  0x10   :  { %12 = vsyncpa [#allocation3], 0  ;;  %413 = vmatprep.subr.bf16.mxu1 %v487_v1  ;;  %v90_v14 = vand.u32 %v448_v10, %v88_v11  ;;  %v28_v15 = vld [vmem:[%s633_s0] sm:$0xff]  ;;  %vm81_vm3 = vcmask 678912   ;;  %v454_v18 = vld [vmem:[%s636_s3 + $0x28] sm:$0xff]   ;;  %vm286_vm4 = vcmask 523264  }
  0x11   :  { %414 = vmatpush3.bf16.msra.mxu1 %v452_v13  ;;  %v453_v16 = vld [vmem:[%s636_s3 + $0x20] sm:$0xff]   ;;  %v29_v17 = vpack.c.bf16 %v28_v15, %v28_v15  ;;  %v455_v19 = vld [vmem:[%s636_s3 + $0x30] sm:$0xff]   ;;  %v456_v20 = vld [vmem:[%s636_s3 + $0x38] sm:$0xff]   ;;  %vm331_vm5 = vcmask 162816  }
  0x12   :  { %400 = vmatpush3.bf16.msra.mxu0 %v447_v9  ;;  %415 = vmatprep.subr.bf16.mxu1 %v487_v1  ;;  %v457_v21 = vld [vmem:[%s638_s5] sm:$0xff]   ;;  %v458_v22 = vld [vmem:[%s638_s5 + $0x8] sm:$0xff]   ;;  %v459_v31 = vld [vmem:[%s638_s5 + $0x10] sm:$0xff]  }
  0x13   :  { %401 = vmatprep.subr.bf16.mxu0 %v487_v1  ;;  %v347_v23 = vld [vmem:[%s635_s2] ss:$0 sm:$0xff]  ;;  %v460_v32 = vld [vmem:[%s638_s5 + $0x18] sm:$0xff]  }
  0x14   :  { %v355_v33 = vld [vmem:[%s637_s4] ss:$0 sm:$0xff]  ;;  %s490_s4 = smov [#allocation2]  }
  0x15   :  { %416 = vmatpush3.bf16.msra.mxu1 %v453_v16  ;;  %v364_v41 = vld [vmem:[%s639_s6] ss:$0 sm:$0xff]  ;;  %s339_s5 = sshll.u32 %s490_s4, 4  ;;  %s340_s5 = int_to_ptr.vmem [resolvable:$true] %s339_s5 }
  0x16   :  { %402 = vmatpush3.bf16.msra.mxu0 %v90_v14  ;;  %417 = vmatprep.subr.bf16.mxu1 %v487_v1  ;;  %s463_s18 = scalar_lea.vmem %s340_s5, 128  ;;  %p468_p1 = scmp.lt.s32.totalorder %s340_s5, %s340_s5 }
  0x17   :  { %427 = vmatprep.subr.bf16.mxu0 %v487_v1  ;;  %p464_p0 = scmp.ne.s32.totalorder %s340_s5, %s463_s18  ;;  %p469_p2 = scmp.lt.s32.totalorder %s463_s18, %s463_s18 }
  0x19   :  { %404 = vmatmul.mubr.msk.bf16.vlgmr.msra.gmra.mrb[0].mxu0 %vm81_vm3, %v29_v17  ;;  %418 = vmatpush3.bf16.msra.mxu1 %v454_v18  ;;  %p470_p3 = por %p469_p2, %p468_p1 }
  0x1a   :  { %435 = vmatprep.mubr.msk.bf16.mxu0 %vm488_vm1, %v487_v1  ;;  %419 = vmatprep.subr.bf16.mxu1 %v487_v1 }
  0x1b   :  { %428 = vmatpush3.bf16.msra.mxu0 %v457_v21  ;;  %p471_p4 = pnand %p470_p3, %p464_p0 }
  0x1c   :  { %429 = vmatprep.subr.bf16.mxu0 %v487_v1 }
  0x1d   :  { %420 = vmatpush3.bf16.msra.mxu1 %v455_v19 }
  0x1e   :  { %421 = vmatprep.subr.bf16.mxu1 %v487_v1 }
  0x1f   :  { %430 = vmatpush3.bf16.msra.mxu0 %v458_v22 }
  0x20   :  { %431 = vmatprep.subr.bf16.mxu0 %v487_v1 }
  0x21   :  { %422 = vmatpush3.bf16.msra.mxu1 %v456_v20 }
  0x23   :  { %432 = vmatpush3.bf16.msra.mxu0 %v459_v31 }
  0x24   :  { %433 = vmatprep.subr.bf16.mxu0 %v487_v1 }
  0x27   :  { %434 = vmatpush3.bf16.msra.mxu0 %v460_v32 }
  0xec   :  { %v126_v24 = vpop.f32.mrb[0].mxu0 }
  0xed   :  { %v127_v25 = vadd.f32 %v347_v23, %v126_v24  ;;  %v405_v26 = vpop.f32.mrb[1].mxu0 }
  0xee   :  { %v129_v27 = vpop.f32.mrb[2].mxu0 }
  0xef   :  { %v132_v28 = vmax.f32 %v127_v25, 0.0  ;;  %v406_v29 = vpop.f32.mrb[3].mxu0 }
  0xf1   :  { %v133_v30 = vpack.c.bf16 %v132_v28, %v132_v28 }
  0xf3   :  { %424 = vmatmul.mubr.bf16.vlgmr.msra.gmra.mrb[0].mxu1 %v133_v30 }
 0x1c6   :  { %v239_v34 = vpop.f32.mrb[0].mxu1 }
 0x1c7   :  { %v240_v35 = vadd.f32 %v355_v33, %v239_v34  ;;  %v425_v36 = vpop.f32.mrb[1].mxu1 }
 0x1c8   :  { %v242_v37 = vpop.f32.mrb[2].mxu1 }
 0x1c9   :  { %v245_v38 = vmax.f32 %v240_v35, 0.0  ;;  %v426_v39 = vpop.f32.mrb[3].mxu1 }
 0x1cb   :  { %v246_v40 = vpack.c.bf16 %v245_v38, %v245_v38 }
 0x1cd   :  { %436 = vmatmul.mubr.msk.bf16.vlgmr.msra.gmra.mrb[4].mxu0 %vm286_vm4, %v246_v40 }
 0x2a0   :  { %v324_v42 = vpop.f32.mrb[4].mxu0 }
 0x2a1   :  { %v325_v43 = vadd.f32 %v364_v41, %v324_v42  ;;  %v437_v44 = vpop.f32.mrb[5].mxu0 }
 0x2a2   :  { %v327_v45 = vpop.f32.mrb[6].mxu0 }
 0x2a3   :  { %461 = vtanh.f32 %v325_v43  ;;  %v438_v46 = vpop.f32.mrb[7].mxu0 }
 0x2ad   :  { %v462_v47 = vpop.eup %461 }
 0x2ae   :  { %332 = vst.msk [vmem:[#allocation2] sm:$0xff] %vm331_vm5, %v462_v47 }
 0x2af   :  { %474 = shalt.err (!%p471_p4)
}
 0x2b0   :  { %s475_s20 = scalar_lea.hbm %s640_s7, 128 }
 0x2b1   :  { %p476_p5 = scmp.ne.s32.totalorder %s640_s7, %s475_s20  ;;  %p479_p6 = scmp.lt.u32.totalorder %s475_s20, %s640_s7 }
 0x2b3   :  { %p481_p7 = pnand %p479_p6, %p476_p5 }
 0x2b5   :  { %484 = shalt.err (!%p481_p7)
}
 0x2b6   :  { %342 = dma.vmem_to_hbm [thread:$0]  %s340_s5, 128, %s640_s7, [#allocation3]  }
 0x2b7   :  { %485 = dma.done.wait [#allocation3], 128  }
 0x2b8   :  { %486 = vsyncadd [#allocation3], 4294967168 }
 0x2b9   :  { %346 = vsyncpa [#allocation3], 1 }

</bundles_post_ra>
